<compile_context>
chip_gen: v7x
topology: tpu7x:2x2x1
jax: 0.10.0
libtpu: 0.0.40
codegen_flags: <defaults>
</compile_context>

<pallas_src>
import functools
import math

import jax
import jax.numpy as jnp
from jax.experimental import pallas as pl
from jax.experimental.pallas import tpu as pltpu


def _round_up(n, m):
    return ((n + m - 1) // m) * m


def _vmem_budget_and_limit():
    """Generation-aware VMEM budget (v7x: 64 MiB physical, v5e/v6e: 128 MiB)."""
    cap = 64 * 1024 * 1024  # conservative default (v7x per-core) if query fails
    try:
        val = getattr(pltpu.get_tpu_info(), "vmem_capacity_bytes", None)
        if val:
            cap = int(val)
    except Exception:
        pass
    budget = min(int(cap * 0.6), 56 * 1024 * 1024)   # working-set target
    limit = min(cap, budget + 8 * 1024 * 1024)       # scoped-VMEM limit + headroom
    return budget, limit


def _choose_tile_rows(rows, width, itemsize, vmem_budget):
    """Byte-sized tiles: ~2 MiB of HBM data per input per grid step, clamped so
    the whole VMEM working set (double-buffered inputs + f32 temporaries +
    accumulator) fits the generation-aware budget."""
    wp = _round_up(width, 128)     # lane-padded width of an input row in VMEM
    gp = 128                       # per-row hinge arrays are lane-padded to 128
    vmem_row = (2 * 2 * wp * itemsize      # x, y: 2 inputs x 2 DMA buffers (native dtype)
                + 2 * gp * 4               # label: 2 DMA buffers (f32)
                + 4 * wp * 4               # f32 W-wide temporaries (casts, diff, sq)
                + 6 * gp * 4)              # G-wide temporaries + accumulator scratch
    target_hbm_bytes = 2 * 1024 * 1024
    tr = min(max(target_hbm_bytes // (width * itemsize), 8),
             max(vmem_budget // vmem_row, 8))
    tr = min(tr, _round_up(rows, 8))
    return max(8, (tr // 8) * 8)


def _contrastive_kernel(x_ref, y_ref, lab_ref, out_ref, acc_ref, *,
                        margin_pos, margin_neg, rows_valid, tile_rows,
                        tiles_per_core, feat, groups):
    c = pl.program_id(0)            # TensorCore split ("parallel")
    j = pl.program_id(1)            # sequential reduction axis ("arbitrary")
    t = c * tiles_per_core + j      # unclamped logical tile id (phantom tiles mask out)

    @pl.when(j == 0)
    def _init():
        acc_ref[...] = jnp.zeros_like(acc_ref)

    x = x_ref[...].astype(jnp.float32)        # (tile_rows, groups*feat)
    y = y_ref[...].astype(jnp.float32)
    lab = lab_ref[...]                        # (tile_rows, groups) f32

    diff = x - y
    sq = diff * diff

    if groups == 1:
        # Plain per-row reduce over the feature (lane) axis.
        row_sq = jnp.sum(sq, axis=1, keepdims=True)               # (tile_rows, 1)
    else:
        # Grouped per-logical-row reduce via a 0/1 indicator matmul on the
        # otherwise-idle MXU (full f32 precision), keeping XLU out of the loop.
        width = groups * feat
        col = jax.lax.broadcasted_iota(jnp.int32, (width, groups), 0)
        grp = jax.lax.broadcasted_iota(jnp.int32, (width, groups), 1)
        lo = grp * feat
        gmat = ((col >= lo) & (col < lo + feat)).astype(jnp.float32)
        row_sq = jnp.dot(sq, gmat, preferred_element_type=jnp.float32,
                         precision=jax.lax.Precision.HIGHEST)     # (tile_rows, groups)

    dist = jnp.sqrt(row_sq + 1e-12)
    per = (lab * jnp.maximum(dist - margin_pos, 0.0)
           + (1.0 - lab) * jnp.maximum(margin_neg - dist, 0.0))

    # Mask rows past the true extent (ragged last block, phantom tail tiles).
    row_ids = (jax.lax.broadcasted_iota(jnp.int32, (tile_rows, groups), 0)
               + t * tile_rows)
    per = jnp.where(row_ids < rows_valid, per, 0.0)

    acc_ref[...] += per             # steady-state: VPU add only (no reduce, no SMEM)

    @pl.when(j == tiles_per_core - 1)
    def _finalize():
        total = jnp.sum(acc_ref[...])                             # one reduce per core
        out_ref[...] = jnp.broadcast_to(total, out_ref.shape)     # lane-dense store


def contrastive_loss(x, y, label, margin_pos, margin_neg, tile_rows=None,
                     num_core_splits=2):
    """JAX/Pallas equivalent of ContrastiveLoss(margin_pos, margin_neg)(x, y, label).

    x, y: (B, D) arrays (any float dtype, kept in native dtype for the DMA);
    label: (B,) array of 0/1.  Returns a scalar float32 loss.
    """
    assert margin_pos <= margin_neg
    B, D = x.shape

    # Lane-density fold (review item 6): for D < 128 view (B, D) as
    # (B/fold, fold*D) so the last (lane) dim is a multiple of 128.  This is a
    # contiguous row-major reshape -> no HBM copy.  Falls back to fold=1 when
    # it does not apply cleanly.
    fold = 1
    if D < 128:
        f = (D * 128 // math.gcd(D, 128)) // D      # lcm(D, 128) // D
        if f <= 128 and B % f == 0:
            fold = f
    R, W = B // fold, D * fold

    xv = x.reshape(R, W)
    yv = y.reshape(R, W)
    lab = label.astype(jnp.float32).reshape(R, fold)

    budget, vmem_limit = _vmem_budget_and_limit()
    tr = tile_rows if tile_rows is not None else _choose_tile_rows(
        R, W, x.dtype.itemsize, budget)

    num_tiles = pl.cdiv(R, tr)
    n_split = num_core_splits if num_tiles >= num_core_splits else 1
    tiles_per_core = pl.cdiv(num_tiles, n_split)

    def in_map(c, j):
        # Clamp phantom tail tiles (num_tiles % n_split != 0) onto the last
        # real tile; the kernel masks their contribution with the unclamped id.
        return (jnp.minimum(c * tiles_per_core + j, num_tiles - 1), 0)

    kernel = functools.partial(
        _contrastive_kernel,
        margin_pos=float(margin_pos), margin_neg=float(margin_neg),
        rows_valid=R, tile_rows=tr, tiles_per_core=tiles_per_core,
        feat=D, groups=fold)

    out = pl.pallas_call(
        kernel,
        out_shape=jax.ShapeDtypeStruct((n_split, 8, 128), jnp.float32),
        grid_spec=pltpu.PrefetchScalarGridSpec(
            num_scalar_prefetch=0,
            grid=(n_split, tiles_per_core),
            in_specs=[
                pl.BlockSpec((tr, W), in_map),        # x tile (native dtype)
                pl.BlockSpec((tr, W), in_map),        # y tile (native dtype)
                pl.BlockSpec((tr, fold), in_map),     # label tile (f32, tiny)
            ],
            out_specs=pl.BlockSpec((1, 8, 128), lambda c, j: (c, 0, 0)),
            scratch_shapes=[pltpu.VMEM((tr, fold), jnp.float32)],
        ),
        compiler_params=pltpu.CompilerParams(
            dimension_semantics=("parallel", "arbitrary"),
            vmem_limit_bytes=vmem_limit,
        ),
    )(xv, yv, lab)

    # Per-core partial sums -> scalar.  Both hinge terms share the same 1/B.
    return jnp.sum(out[:, 0, 0]) / B


def _reference_loss(x, y, label, margin_pos, margin_neg):
    xf = x.astype(jnp.float32)
    yf = y.astype(jnp.float32)
    lf = label.astype(jnp.float32)
    dist = jnp.sqrt(jnp.sum((xf - yf) ** 2, axis=1) + 1e-12)
    return (jnp.mean(lf * jnp.maximum(dist - margin_pos, 0.0))
            + jnp.mean((1.0 - lf) * jnp.maximum(margin_neg - dist, 0.0)))


if __name__ == "__main__":
    margin_pos, margin_neg = 0.5, 1.5

    # Test 1: f32, D=32 -> lane-dense fold (fold=4, W=128), single tile.
    kx, ky, kl = jax.random.split(jax.random.PRNGKey(0), 3)
    B, D = 32, 32
    x = jax.random.normal(kx, (B, D), dtype=jnp.float32)
    y = jax.random.normal(ky, (B, D), dtype=jnp.float32)
    label = jax.random.bernoulli(kl, p=0.5, shape=(B,)).astype(jnp.float32)
    loss = jax.block_until_ready(contrastive_loss(x, y, label, margin_pos, margin_neg))
    ref = _reference_loss(x, y, label, margin_pos, margin_neg)
    assert jnp.allclose(loss, ref, rtol=1e-4, atol=1e-6), (loss, ref)

    # Test 2: bf16 inputs (cast to f32 in-kernel), ragged last block (no pad)
    # and the 2-way core split with per-core partial sums.
    kx, ky, kl = jax.random.split(jax.random.PRNGKey(1), 3)
    B, D = 40, 32
    x = jax.random.normal(kx, (B, D), jnp.float32).astype(jnp.bfloat16)
    y = jax.random.normal(ky, (B, D), jnp.float32).astype(jnp.bfloat16)
    label = jax.random.bernoulli(kl, p=0.5, shape=(B,)).astype(jnp.float32)
    loss = jax.block_until_ready(
        contrastive_loss(x, y, label, margin_pos, margin_neg, tile_rows=8))
    ref = _reference_loss(x, y, label, margin_pos, margin_neg)
    assert jnp.allclose(loss, ref, rtol=1e-4, atol=1e-6), (loss, ref)

    # Test 3: shapes that defeat the fold -> unfolded fallback, odd tile count
    # (one phantom, fully-masked tail tile on the second core split).
    kx, ky, kl = jax.random.split(jax.random.PRNGKey(2), 3)
    B, D = 21, 48
    x = jax.random.normal(kx, (B, D), jnp.float32)
    y = jax.random.normal(ky, (B, D), jnp.float32)
    label = jax.random.bernoulli(kl, p=0.5, shape=(B,)).astype(jnp.float32)
    loss = jax.block_until_ready(
        contrastive_loss(x, y, label, margin_pos, margin_neg, tile_rows=8))
    ref = _reference_loss(x, y, label, margin_pos, margin_neg)
    assert jnp.allclose(loss, ref, rtol=1e-4, atol=1e-6), (loss, ref)

    print("KERNEL_OK")
</pallas_src>

<mosaic_0001>
module attributes {stable_mosaic.version = 11 : i64} {
  func.func @_contrastive_kernel(%arg0: i32, %arg1: i32, %arg2: memref<8x128xf32, #tpu.memory_space<vmem>>, %arg3: memref<8x128xf32, #tpu.memory_space<vmem>>, %arg4: memref<8x4xf32, #tpu.memory_space<vmem>>, %arg5: memref<1x8x128xf32, #tpu.memory_space<vmem>>, %arg6: memref<8x4xf32, #tpu.memory_space<vmem>>) attributes {dimension_semantics = [#tpu.dimension_semantics<parallel>, #tpu.dimension_semantics<arbitrary>], iteration_bounds = array<i64: 1, 1>, scalar_prefetch = 0 : i64, scratch_operands = 1 : i64, tpu.core_type = #tpu.core_type<tc>, window_params = [{transform_indices = @transform_0, window_bounds = array<i64: 8, 128>}, {transform_indices = @transform_1, window_bounds = array<i64: 8, 128>}, {transform_indices = @transform_2, window_bounds = array<i64: 8, 4>}, {transform_indices = @transform_3, window_bounds = array<i64: 1, 8, 128>}]} {
    %c1_i32 = arith.constant 1 : i32
    %0 = arith.muli %arg0, %c1_i32 : i32
    %1 = arith.addi %0, %arg1 : i32
    %c0_i32 = arith.constant 0 : i32
    %2 = arith.cmpi eq, %arg1, %c0_i32 : i32
    %3 = arith.extui %2 : i1 to i32
    %c0_i32_0 = arith.constant 0 : i32
    %4 = arith.cmpi ne, %3, %c0_i32_0 : i32
    scf.if %4 {
      %cst_21 = arith.constant 0.000000e+00 : f32
      %52 = vector.broadcast %cst_21 : f32 to vector<8x4xf32>
      %c0_22 = arith.constant 0 : index
      %c0_23 = arith.constant 0 : index
      %53 = vector.load %arg6[%c0_22, %c0_23] : memref<8x4xf32, #tpu.memory_space<vmem>>, vector<8x4xf32>
      tpu.vector_store %arg6[%c0_22, %c0_23], %52 {strides = array<i32>} : memref<8x4xf32, #tpu.memory_space<vmem>>, vector<8x4xf32>,
    } else {
    }
    %c0 = arith.constant 0 : index
    %c0_1 = arith.constant 0 : index
    %5 = vector.load %arg2[%c0, %c0_1] : memref<8x128xf32, #tpu.memory_space<vmem>>, vector<8x128xf32>
    %c0_2 = arith.constant 0 : index
    %c0_3 = arith.constant 0 : index
    %6 = vector.load %arg3[%c0_2, %c0_3] : memref<8x128xf32, #tpu.memory_space<vmem>>, vector<8x128xf32>
    %c0_4 = arith.constant 0 : index
    %c0_5 = arith.constant 0 : index
    %7 = vector.load %arg4[%c0_4, %c0_5] : memref<8x4xf32, #tpu.memory_space<vmem>>, vector<8x4xf32>
    %8 = arith.subf %5, %6 : vector<8x128xf32>
    %9 = arith.mulf %8, %8 : vector<8x128xf32>
    %10 = tpu.iota {dimensions = array<i32: 0>} : vector<128x4xi32>
    %11 = tpu.iota {dimensions = array<i32: 1>} : vector<128x4xi32>
    %c32_i32 = arith.constant 32 : i32
    %12 = vector.broadcast %c32_i32 : i32 to vector<128x4xi32>
    %13 = arith.muli %11, %12 : vector<128x4xi32>
    %14 = arith.cmpi sge, %10, %13 : vector<128x4xi32>
    %c32_i32_6 = arith.constant 32 : i32
    %15 = vector.broadcast %c32_i32_6 : i32 to vector<128x4xi32>
    %16 = arith.addi %13, %15 : vector<128x4xi32>
    %17 = arith.cmpi slt, %10, %16 : vector<128x4xi32>
    %18 = arith.andi %14, %17 : vector<128x4xi1>
    %19 = arith.extui %18 : vector<128x4xi1> to vector<128x4xi32>
    %20 = arith.sitofp %19 : vector<128x4xi32> to vector<128x4xf32>
    %cst = arith.constant dense<0.000000e+00> : vector<8x4xf32>
    %21 = tpu.matmul %9, %20, %cst {dimension_numbers = #tpu.dot_dimension_numbers<[1], [0], [0], [1], [0, 0, 1, 1], [], []>, precision = #tpu.contract_precision<fp32>} : vector<8x128xf32>, vector<128x4xf32>, vector<8x4xf32> -> vector<8x4xf32>
    %cst_7 = arith.constant 9.99999996E-13 : f32
    %22 = vector.broadcast %cst_7 : f32 to vector<8x4xf32>
    %23 = arith.addf %21, %22 : vector<8x4xf32>
    %24 = math.sqrt %23 : vector<8x4xf32>
    %cst_8 = arith.constant 5.000000e-01 : f32
    %25 = vector.broadcast %cst_8 : f32 to vector<8x4xf32>
    %26 = arith.subf %24, %25 : vector<8x4xf32>
    %cst_9 = arith.constant 0.000000e+00 : f32
    %27 = vector.broadcast %cst_9 : f32 to vector<8x4xf32>
    %28 = arith.maximumf %26, %27 : vector<8x4xf32>
    %29 = arith.mulf %7, %28 : vector<8x4xf32>
    %cst_10 = arith.constant 1.000000e+00 : f32
    %30 = vector.broadcast %cst_10 : f32 to vector<8x4xf32>
    %31 = arith.subf %30, %7 : vector<8x4xf32>
    %cst_11 = arith.constant 1.500000e+00 : f32
    %32 = vector.broadcast %cst_11 : f32 to vector<8x4xf32>
    %33 = arith.subf %32, %24 : vector<8x4xf32>
    %cst_12 = arith.constant 0.000000e+00 : f32
    %34 = vector.broadcast %cst_12 : f32 to vector<8x4xf32>
    %35 = arith.maximumf %33, %34 : vector<8x4xf32>
    %36 = arith.mulf %31, %35 : vector<8x4xf32>
    %37 = arith.addf %29, %36 : vector<8x4xf32>
    %38 = tpu.iota {dimensions = array<i32: 0>} : vector<8x4xi32>
    %c8_i32 = arith.constant 8 : i32
    %39 = arith.muli %1, %c8_i32 : i32
    %40 = vector.broadcast %39 : i32 to vector<8x4xi32>
    %41 = arith.addi %38, %40 : vector<8x4xi32>
    %c8_i32_13 = arith.constant 8 : i32
    %42 = vector.broadcast %c8_i32_13 : i32 to vector<8x4xi32>
    %43 = arith.cmpi slt, %41, %42 : vector<8x4xi32>
    %cst_14 = arith.constant 0.000000e+00 : f32
    %44 = vector.broadcast %cst_14 : f32 to vector<8x4xf32>
    %45 = arith.select %43, %37, %44 : vector<8x4xi1>, vector<8x4xf32>
    %c0_15 = arith.constant 0 : index
    %c0_16 = arith.constant 0 : index
    %46 = vector.load %arg6[%c0_15, %c0_16] : memref<8x4xf32, #tpu.memory_space<vmem>>, vector<8x4xf32>
    %47 = arith.addf %46, %45 : vector<8x4xf32>
    %c0_17 = arith.constant 0 : index
    %c0_18 = arith.constant 0 : index
    %48 = vector.load %arg6[%c0_17, %c0_18] : memref<8x4xf32, #tpu.memory_space<vmem>>, vector<8x4xf32>
    tpu.vector_store %arg6[%c0_17, %c0_18], %47 {strides = array<i32>} : memref<8x4xf32, #tpu.memory_space<vmem>>, vector<8x4xf32>,
    %c0_i32_19 = arith.constant 0 : i32
    %49 = arith.cmpi eq, %arg1, %c0_i32_19 : i32
    %50 = arith.extui %49 : i1 to i32
    %c0_i32_20 = arith.constant 0 : i32
    %51 = arith.cmpi ne, %50, %c0_i32_20 : i32
    scf.if %51 {
      %c0_21 = arith.constant 0 : index
      %c0_22 = arith.constant 0 : index
      %52 = vector.load %arg6[%c0_21, %c0_22] : memref<8x4xf32, #tpu.memory_space<vmem>>, vector<8x4xf32>
      %53 = vector.shape_cast %52 : vector<8x4xf32> to vector<1x8x4xf32>
      %cst_23 = arith.constant dense<0.000000e+00> : vector<1xf32>
      %54 = vector.multi_reduction <add>, %53, %cst_23 [1, 2] : vector<1x8x4xf32> to vector<1xf32>
      %55 = vector.shape_cast %54 : vector<1xf32> to vector<1x1x1xf32>
      %56 = vector.extract %55[0, 0, 0] : f32 from vector<1x1x1xf32>
      %57 = vector.broadcast %56 : f32 to vector<1x8x128xf32>
      %c0_24 = arith.constant 0 : index
      %c0_25 = arith.constant 0 : index
      %c0_26 = arith.constant 0 : index
      %58 = vector.load %arg5[%c0_24, %c0_25, %c0_26] : memref<1x8x128xf32, #tpu.memory_space<vmem>>, vector<1x8x128xf32>
      tpu.vector_store %arg5[%c0_24, %c0_25, %c0_26], %57 {strides = array<i32>} : memref<1x8x128xf32, #tpu.memory_space<vmem>>, vector<1x8x128xf32>,
    } else {
    }
    return
  }
  func.func @transform_0(%arg0: i32, %arg1: i32) -> (i32, i32) {
    %c1_i32 = arith.constant 1 : i32
    %0 = arith.muli %arg0, %c1_i32 : i32
    %1 = arith.addi %0, %arg1 : i32
    %c0_i32 = arith.constant 0 : i32
    %2 = arith.minsi %1, %c0_i32 : i32
    %c0_i32_0 = arith.constant 0 : i32
    %c0_i32_1 = arith.constant 0 : i32
    return %2, %c0_i32_0 : i32, i32
  }
  func.func @transform_1(%arg0: i32, %arg1: i32) -> (i32, i32) {
    %c1_i32 = arith.constant 1 : i32
    %0 = arith.muli %arg0, %c1_i32 : i32
    %1 = arith.addi %0, %arg1 : i32
    %c0_i32 = arith.constant 0 : i32
    %2 = arith.minsi %1, %c0_i32 : i32
    %c0_i32_0 = arith.constant 0 : i32
    %c0_i32_1 = arith.constant 0 : i32
    return %2, %c0_i32_0 : i32, i32
  }
  func.func @transform_2(%arg0: i32, %arg1: i32) -> (i32, i32) {
    %c1_i32 = arith.constant 1 : i32
    %0 = arith.muli %arg0, %c1_i32 : i32
    %1 = arith.addi %0, %arg1 : i32
    %c0_i32 = arith.constant 0 : i32
    %2 = arith.minsi %1, %c0_i32 : i32
    %c0_i32_0 = arith.constant 0 : i32
    %c0_i32_1 = arith.constant 0 : i32
    return %2, %c0_i32_0 : i32, i32
  }
  func.func @transform_3(%arg0: i32, %arg1: i32) -> (i32, i32, i32) {
    %c0_i32 = arith.constant 0 : i32
    %c0_i32_0 = arith.constant 0 : i32
    %c0_i32_1 = arith.constant 0 : i32
    return %arg0, %c0_i32, %c0_i32_0 : i32, i32, i32
  }
}

</mosaic_0001>

<bundles_post_ra>
// kernel: tpu_custom_call.1
= control target key start
LH: loop header
LB: loop body
LE: loop exit
PB: predicated region body
PF: predicated region fallthrough
CT: control target
= control target key end

     0   :  { %8 = vsyncpa [#allocation4], 0  ;;  %s2038_s0 = inlined_call_operand.vmem [shape: f32[8,128], index: 0, kind: input, shape index: {}]   ;;  %s2039_s1 = inlined_call_operand.hbm [shape: f32[8,128], index: 1, kind: input, shape index: {}]   ;;  %s2040_s2 = inlined_call_operand.vmem [shape: f32[8,4], index: 2, kind: input, shape index: {}]   ;;  %s2041_s3 = inlined_call_operand.hbm [shape: f32[1,8,128], index: 3, kind: output, shape index: {}]  }
   0x1   :  { %9 = vsyncpa [#allocation5], 0  ;;  %s1501_s12 = smov [#allocation3]   ;;  %s1453_s16 = scalar_lea.hbm %s2039_s1, 128 }
   0x2   :  { %s33_s13 = sshll.u32 %s1501_s12, 4  ;;  %p1454_p0 = scmp.ne.s32.totalorder %s2039_s1, %s1453_s16  ;;  %s34_s13 = int_to_ptr.vmem [resolvable:$true] %s33_s13 }
   0x3   :  { %p1457_p1 = scmp.lt.u32.totalorder %s1453_s16, %s2039_s1 }
   0x5   :  { %p1459_p2 = pnand %p1457_p1, %p1454_p0 }
   0x7   :  { %1462 = shalt.err (!%p1459_p2)
}
   0x8   :  { %s1463_s21 = scalar_lea.vmem %s34_s13, 128  ;;  %p1468_p4 = scmp.lt.s32.totalorder %s34_s13, %s34_s13 }
   0x9   :  { %p1464_p3 = scmp.ne.s32.totalorder %s34_s13, %s1463_s21  ;;  %p1469_p5 = scmp.lt.s32.totalorder %s1463_s21, %s1463_s21 }
   0xb   :  { %p1470_p6 = por %p1469_p5, %p1468_p4 }
   0xd   :  { %p1471_p7 = pnand %p1470_p6, %p1464_p3 }
   0xf   :  { %1474 = shalt.err (!%p1471_p7)
}
  0x10   :  { %36 = dma.hbm_to_vmem [thread:$0]  %s2039_s1, 128, %s34_s13, [#allocation4]   ;;  %v101_v0 = vlaneseq }
  0x11   :  { %1497 = dma.done.wait [#allocation4], 128  }
  0x12   :  { %1498 = vsyncadd [#allocation4], 4294967168  ;;  %v1502_v1 = vmov 0.0|0.0   ;;  %v1541_v2 = vshrl.u32 %v101_v0, 7  ;;  %v119_v3 = vand.u32 127, %v101_v0  ;;  %vm2042_vm0 = vmmov 0  }
  0x13   :  { %1289 = vmatprep.subr.bf16.mxu1 %v1502_v1  ;;  %1361 = vmatprep.subr.bf16.mxu0 %v1502_v1  ;;  %v1504_v4 = vmov 0.0   ;;  %v2052_v14 = vmov 0  ;;  %v1505_v16 = vmov 1.0|1.0   ;;  %v2058_v20 = vmov 0  ;;  %v96_v30 = vld [vmem:[%s2038_s0] sm:$0xff] }
  0x14   :  { %1111 = vmatprep.mubr.msk.f32.mxu1 %vm2042_vm0, %v1504_v4  ;;  %1216 = vmatprep.mubr.msk.f32.mxu0 %vm2042_vm0, %v1504_v4  ;;  %v103_v5 = vadd.s32 8, %v1541_v2  ;;  %v1548_v6 = vmul.u32 32, %v119_v3  ;;  %v104_v7 = vadd.s32 16, %v1541_v2  ;;  %v105_v9 = vadd.s32 24, %v1541_v2  ;;  %v97_v31 = vld [vmem:[#allocation3] sm:$0xff] }
  0x15   :  { %v106_v10 = vadd.s32 32, %v1541_v2  ;;  %v107_v12 = vadd.s32 40, %v1541_v2  ;;  %v108_v15 = vadd.s32 48, %v1541_v2  ;;  %v109_v18 = vadd.s32 56, %v1541_v2 }
  0x16   :  { %vm121_vm1 = vcmp.ge.s32.totalorder %v1541_v2, %v1548_v6  ;;  %v1554_v8 = vadd.s32 32, %v1548_v6  ;;  %vm122_vm2 = vcmp.ge.s32.totalorder %v103_v5, %v1548_v6  ;;  %vm123_vm6 = vcmp.ge.s32.totalorder %v104_v7, %v1548_v6 }
  0x17   :  { %vm124_vm9 = vcmp.ge.s32.totalorder %v105_v9, %v1548_v6  ;;  %vm125_vm13 = vcmp.ge.s32.totalorder %v106_v10, %v1548_v6  ;;  %v110_v21 = vadd.s32 64, %v1541_v2  ;;  %v111_v23 = vadd.s32 72, %v1541_v2 }
  0x18   :  { %vm138_vm3 = vcmp.lt.s32.totalorder %v1541_v2, %v1554_v8  ;;  %vm139_vm4 = vcmp.lt.s32.totalorder %v103_v5, %v1554_v8  ;;  %vm140_vm7 = vcmp.lt.s32.totalorder %v104_v7, %v1554_v8  ;;  %vm141_vm10 = vcmp.lt.s32.totalorder %v105_v9, %v1554_v8 }
  0x19   :  { %vm1562_vm5 = vmand %vm121_vm1, %vm138_vm3  ;;  %vm142_vm14 = vcmp.lt.s32.totalorder %v106_v10, %v1554_v8  ;;  %vm126_vm1 = vcmp.ge.s32.totalorder %v107_v12, %v1548_v6  ;;  %v2062_v24 = vmov 0  ;;  %v2064_v25 = vmov 0 }
  0x1a   :  { %vm1569_vm8 = vmand %vm122_vm2, %vm139_vm4  ;;  %vm143_vm2 = vcmp.lt.s32.totalorder %v107_v12, %v1554_v8  ;;  %v112_v26 = vadd.s32 80, %v1541_v2  ;;  %vm146_vm0 = vcmp.lt.s32.totalorder %v110_v21, %v1554_v8  ;;  %v113_v28 = vadd.s32 88, %v1541_v2 }
  0x1b   :  { %vm1579_vm11 = vmpackc.low %vm1569_vm8, %vm1562_vm5  ;;  %v912_v32 = vsel %vm1562_vm5, 1.0, %v1504_v4  ;;  %v913_v34 = vsel %vm1569_vm8, 1.0, %v1504_v4  ;;  %v114_v36 = vadd.s32 96, %v1541_v2  ;;  %v115_v38 = vadd.s32 104, %v1541_v2 }
  0x1c   :  { %v2053_v14 = vsel %vm1579_vm11, 4294967295, %v2052_v14  ;;  %1291 = vmatpush3.bf16.msk.msra.mxu1 %vm1579_vm11, %v1505_v16  ;;  %1363 = vmatpush3.bf16.msk.msra.mxu0 %vm1579_vm11, %v1505_v16  ;;  %vm1590_vm12 = vmand %vm123_vm6, %vm140_vm7  ;;  %vm127_vm6 = vcmp.ge.s32.totalorder %v108_v15, %v1548_v6  ;;  %vm144_vm7 = vcmp.lt.s32.totalorder %v108_v15, %v1554_v8  ;;  %vm130_vm11 = vcmp.ge.s32.totalorder %v111_v23, %v1548_v6 }
  0x1d   :  { %1292 = vmatprep.subr.bf16.mxu1 %v1502_v1  ;;  %1364 = vmatprep.subr.bf16.mxu0 %v1502_v1  ;;  %vm1599_vm15 = vmand %vm124_vm9, %vm141_vm10  ;;  %vm128_vm10 = vcmp.ge.s32.totalorder %v109_v18, %v1548_v6  ;;  %vm132_vm8 = vcmp.ge.s32.totalorder %v113_v28, %v1548_v6  ;;  %v99_v39 = vsub.f32 %v96_v30, %v97_v31  ;;  %v914_v43 = vsel %vm1590_vm12, 1.0, %v1504_v4 }
  0x1e   :  { %vm1609_vm3 = vmpackc.low %vm1599_vm15, %vm1590_vm12  ;;  %v1700_v40 = vsub.f32 %v912_v32, %v912_v32  ;;  %v1710_v42 = vsub.f32 %v913_v34, %v913_v34  ;;  %v915_v46 = vsel %vm1599_vm15, 1.0, %v1504_v4  ;;  %vm150_vm15 = vcmp.lt.s32.totalorder %v114_v36, %v1554_v8 }
  0x1f   :  { %v2059_v20 = vsel %vm1609_vm3, 4294967295, %v2058_v20  ;;  %vm1614_vm4 = vmand %vm125_vm13, %vm142_vm14  ;;  %vm145_vm13 = vcmp.lt.s32.totalorder %v109_v18, %v1554_v8  ;;  %v100_v45 = vmul.f32 %v99_v39, %v99_v39  ;;  %v116_v49 = vadd.s32 112, %v1541_v2 }
  0x20   :  { %1294 = vmatpush3.bf16.msk.msra.mxu1 %vm1609_vm3, %v1505_v16  ;;  %1366 = vmatpush3.bf16.msk.msra.mxu0 %vm1609_vm3, %v1505_v16  ;;  %vm1627_vm9 = vmand %vm126_vm1, %vm143_vm2  ;;  %vm129_vm2 = vcmp.ge.s32.totalorder %v110_v21, %v1548_v6  ;;  %v916_v47 = vsel %vm1614_vm4, 1.0, %v1504_v4  ;;  %v296_v51 = vand.u32 4294901760, %v1700_v40  ;;  %v117_v54 = vadd.s32 120, %v1541_v2 }
  0x21   :  { %v2063_v24 = vsel %vm1627_vm9, 4294967295, %v2062_v24  ;;  %1295 = vmatprep.subr.bf16.mxu1 %v1502_v1  ;;  %1367 = vmatprep.subr.bf16.mxu0 %v1502_v1  ;;  %vm1639_vm14 = vmpackc.low %vm1627_vm9, %vm1614_vm4  ;;  %vm147_vm9 = vcmp.lt.s32.totalorder %v111_v23, %v1554_v8  ;;  %vm151_vm4 = vcmp.lt.s32.totalorder %v115_v38, %v1554_v8  ;;  %v1746_v50 = vand.u32 4294901760, %v100_v45 }
  0x22   :  { %v2065_v25 = vsel %vm1639_vm14, 4294967295, %v2064_v25  ;;  %vm1644_vm1 = vmand %vm127_vm6, %vm144_vm7  ;;  %vm131_vm7 = vcmp.ge.s32.totalorder %v112_v26, %v1548_v6  ;;  %v303_v55 = vand.u32 4294901760, %v1710_v42  ;;  %v1762_v56 = vsub.f32 %v914_v43, %v914_v43 }
  0x23   :  { %vm1651_vm3 = vmand %vm128_vm10, %vm145_vm13  ;;  %vm148_vm10 = vcmp.lt.s32.totalorder %v112_v26, %v1554_v8  ;;  %v1764_v57 = vsub.f32 %v915_v46, %v915_v46  ;;  %v1779_v59 = vsub.f32 %v100_v45, %v1746_v50  ;;  %v1781_v60 = vsub.f32 %v916_v47, %v916_v47 }
  0x24   :  { %1297 = vmatpush3.bf16.msk.msra.mxu1 %vm1639_vm14, %v1505_v16  ;;  %1369 = vmatpush3.bf16.msk.msra.mxu0 %vm1639_vm14, %v1505_v16  ;;  %vm1673_vm6 = vmpackc.low %vm1651_vm3, %vm1644_vm1  ;;  %vm149_vm14 = vcmp.lt.s32.totalorder %v113_v28, %v1554_v8  ;;  %v918_v63 = vsel %vm1644_vm1, 1.0, %v1504_v4  ;;  %v919_v0 = vsel %vm1651_vm3, 1.0, %v1504_v4  ;;  %v297_v3 = vsub.f32 %v1700_v40, %v296_v51 }
  0x25   :  { %1298 = vmatprep.subr.bf16.mxu1 %v1502_v1  ;;  %1370 = vmatprep.subr.bf16.mxu0 %v1502_v1  ;;  %vm1684_vm5 = vmand %vm129_vm2, %vm146_vm0  ;;  %vm134_vm2 = vcmp.ge.s32.totalorder %v115_v38, %v1548_v6  ;;  %v285_v2 = vand.u32 4294901760, %v1779_v59  ;;  %v304_v5 = vsub.f32 %v1710_v42, %v303_v55  ;;  %v310_v7 = vand.u32 4294901760, %v1762_v56 }
  0x26   :  { %vm1693_vm13 = vmand %vm130_vm11, %vm147_vm9  ;;  %vm133_vm9 = vcmp.ge.s32.totalorder %v114_v36, %v1548_v6  ;;  %v317_v9 = vand.u32 4294901760, %v1764_v57  ;;  %v1824_v11 = vsub.f32 %v918_v63, %v918_v63  ;;  %v324_v13 = vand.u32 4294901760, %v1781_v60 }
  0x27   :  { %vm1706_vm0 = vmpackc.low %vm1693_vm13, %vm1684_vm5  ;;  %v1837_v15 = vsub.f32 %v919_v0, %v919_v0  ;;  %v920_v19 = vsel %vm1684_vm5, 1.0, %v1504_v4  ;;  %v921_v21 = vsel %vm1693_vm13, 1.0, %v1504_v4  ;;  %v286_v22 = vsub.f32 %v1779_v59, %v285_v2 }
  0x28   :  { %1300 = vmatpush3.bf16.msk.msra.mxu1 %vm1673_vm6, %v1505_v16  ;;  %1372 = vmatpush3.bf16.msk.msra.mxu0 %vm1673_vm6, %v1505_v16  ;;  %vm1721_vm11 = vmand %vm131_vm7, %vm148_vm10  ;;  %v298_v23 = vand.u32 4294901760, %v297_v3  ;;  %v338_v26 = vand.u32 4294901760, %v1824_v11  ;;  %v1875_v29 = vsub.f32 %v920_v19, %v920_v19  ;;  %v1877_v30 = vsub.f32 %v921_v21, %v921_v21 }
  0x29   :  { %1301 = vmatprep.subr.bf16.mxu1 %v1502_v1  ;;  %1373 = vmatprep.subr.bf16.mxu0 %v1502_v1  ;;  %vm1737_vm12 = vmand %vm132_vm8, %vm149_vm14  ;;  %vm2082_vm14 = vnez %v2063_v24  ;;  %v318_v24 = vsub.f32 %v1764_v57, %v317_v9  ;;  %v345_v28 = vand.u32 4294901760, %v1837_v15  ;;  %v922_v31 = vsel %vm1721_vm11, 1.0, %v1504_v4 }
  0x2a   :  { %v917_v52 = vsel %vm2082_vm14, 1.0, %v1504_v4  ;;  %vm1756_vm7 = vmpackc.low %vm1737_vm12, %vm1721_vm11  ;;  %vm136_vm14 = vcmp.ge.s32.totalorder %v117_v54, %v1548_v6  ;;  %v923_v32 = vsel %vm1737_vm12, 1.0, %v1504_v4  ;;  %v287_v34 = vand.u32 4294901760, %v286_v22 }
  0x2b   :  { %vm1774_vm10 = vmand %vm133_vm9, %vm150_vm15  ;;  %v1793_v62 = vsub.f32 %v917_v52, %v917_v52  ;;  %vm135_vm9 = vcmp.ge.s32.totalorder %v116_v49, %v1548_v6  ;;  %vm152_vm15 = vcmp.lt.s32.totalorder %v116_v49, %v1554_v8  ;;  %v311_v6 = vsub.f32 %v1762_v56, %v310_v7 }
  0x2c   :  { %1303 = vmatpush3.bf16.msk.msra.mxu1 %vm1706_vm0, %v1505_v16  ;;  %1375 = vmatpush3.bf16.msk.msra.mxu0 %vm1706_vm0, %v1505_v16  ;;  %vm1789_vm8 = vmand %vm134_vm2, %vm151_vm4  ;;  %vm153_vm2 = vcmp.lt.s32.totalorder %v117_v54, %v1554_v8  ;;  %v305_v8 = vand.u32 4294901760, %v304_v5  ;;  %v325_v35 = vsub.f32 %v1781_v60, %v324_v13  ;;  %v1386_v38 = vpack.c.bf16 %v303_v55, %v296_v51 }
  0x2d   :  { %1304 = vmatprep.subr.bf16.mxu1 %v1502_v1  ;;  %1376 = vmatprep.subr.bf16.mxu0 %v1502_v1  ;;  %vm1820_vm3 = vmpackc.low %vm1789_vm8, %vm1774_vm10  ;;  %v331_v18 = vand.u32 4294901760, %v1793_v62  ;;  %v312_v39 = vand.u32 4294901760, %v311_v6  ;;  %v319_v43 = vand.u32 4294901760, %v318_v24  ;;  %v352_v44 = vand.u32 4294901760, %v1875_v29 }
  0x2e   :  { %vm1832_vm1 = vmand %vm135_vm9, %vm152_vm15  ;;  %v1314_v37 = vpack.c.bf16 %v305_v8, %v298_v23  ;;  %v1896_v45 = vsub.f32 %v922_v31, %v922_v31  ;;  %v1898_v46 = vsub.f32 %v923_v32, %v923_v32  ;;  %v1389_v47 = vpack.c.bf16 %v317_v9, %v310_v7 }
  0x2f   :  { %vm1843_vm4 = vmand %vm136_vm14, %vm153_vm2  ;;  %v332_v36 = vsub.f32 %v1793_v62, %v331_v18  ;;  %v924_v48 = vsel %vm1774_vm10, 1.0, %v1504_v4  ;;  %v925_v49 = vsel %vm1789_vm8, 1.0, %v1504_v4  ;;  %v326_v51 = vand.u32 4294901760, %v325_v35 }
  0x30   :  { %1306 = vmatpush3.bf16.msk.msra.mxu1 %vm1756_vm7, %v1505_v16  ;;  %1378 = vmatpush3.bf16.msk.msra.mxu0 %vm1756_vm7, %v1505_v16  ;;  %vm1870_vm5 = vmpackc.low %vm1843_vm4, %vm1832_vm1  ;;  %v359_v54 = vand.u32 4294901760, %v1877_v30  ;;  %v1317_v55 = vpack.c.bf16 %v319_v43, %v312_v39  ;;  %v339_v63 = vsub.f32 %v1824_v11, %v338_v26  ;;  %v346_v0 = vsub.f32 %v1837_v15, %v345_v28 }
  0x31   :  { %1307 = vmatprep.subr.bf16.mxu1 %v1502_v1  ;;  %1379 = vmatprep.subr.bf16.mxu0 %v1502_v1  ;;  %v333_v52 = vand.u32 4294901760, %v332_v36  ;;  %v366_v58 = vand.u32 4294901760, %v1896_v45  ;;  %v373_v61 = vand.u32 4294901760, %v1898_v46  ;;  %v1915_v3 = vsub.f32 %v925_v49, %v925_v49 }
  0x32   :  { %vm2097_vm13 = vmmov 0   ;;  %v926_v5 = vsel %vm1832_vm1, 1.0, %v1504_v4  ;;  %v927_v7 = vsel %vm1843_vm4, 1.0, %v1504_v4  ;;  %v1392_v19 = vpack.c.bf16 %v331_v18, %v324_v13 }
  0x33   :  { %v1320_v9 = vpack.c.bf16 %v333_v52, %v326_v51  ;;  %v340_v21 = vand.u32 4294901760, %v339_v63  ;;  %v347_v22 = vand.u32 4294901760, %v346_v0  ;;  %v353_v23 = vsub.f32 %v1875_v29, %v352_v44 }
  0x34   :  { %1309 = vmatpush3.bf16.msk.msra.mxu1 %vm1820_vm3, %v1505_v16  ;;  %1381 = vmatpush3.bf16.msk.msra.mxu0 %vm1820_vm3, %v1505_v16  ;;  %v360_v8 = vsub.f32 %v1877_v30, %v359_v54  ;;  %v387_v6 = vand.u32 4294901760, %v1915_v3  ;;  %v1933_v17 = vsub.f32 %v926_v5, %v926_v5  ;;  %v1935_v24 = vsub.f32 %v927_v7, %v927_v7 }
  0x35   :  { %1310 = vmatprep.subr.bf16.mxu1 %v1502_v1  ;;  %1382 = vmatprep.subr.bf16.mxu0 %v1502_v1  ;;  %v1395_v13 = vpack.c.bf16 %v345_v28, %v338_v26  ;;  %v367_v18 = vsub.f32 %v1896_v45, %v366_v58  ;;  %v1323_v31 = vpack.c.bf16 %v347_v22, %v340_v21  ;;  %v354_v32 = vand.u32 4294901760, %v353_v23 }
  0x36   :  { %v374_v35 = vsub.f32 %v1898_v46, %v373_v61  ;;  %v394_v36 = vand.u32 4294901760, %v1933_v17  ;;  %v1338_v7 = vpack.c.bf16 %v1710_v42, %v1700_v40  ;;  %vm2098_vm11 = vnez %v2053_v14 }
  0x37   :  { %v368_v39 = vand.u32 4294901760, %v367_v18  ;;  %vm2099_vm12 = vnez %v2059_v20  ;;  %v1344_v14 = vpack.c.bf16 %v1793_v62, %v1781_v60  ;;  %vm2100_vm10 = vnez %v2065_v25 }
  0x38   :  { %1312 = vmatpush3.bf16.msk.msra.mxu1 %vm1870_vm5, %v1505_v16  ;;  %1384 = vmatpush3.bf16.msk.msra.mxu0 %vm1870_vm5, %v1505_v16  ;;  %v375_v43 = vand.u32 4294901760, %v374_v35  ;;  %v1347_v40 = vpack.c.bf16 %v1837_v15, %v1824_v11  ;;  %v1350_v20 = vpack.c.bf16 %v1877_v30, %v1875_v29  ;;  %v1353_v25 = vpack.c.bf16 %v1898_v46, %v1896_v45 }
  0x39   :  { %1313 = vmatprep.subr.bf16.mxu1 %v1502_v1  ;;  %1385 = vmatprep.subr.bf16.mxu0 %v1502_v1  ;;  %v1359_v41 = vpack.c.bf16 %v1935_v24, %v1933_v17 }
  0x3a   :  { %v1329_v51 = vpack.c.bf16 %v375_v43, %v368_v39 }
  0x3b   :  { %1112 = vmatmul.mubr.f32.vlgmr.msra.gmra.mrb[0].mxu1 %v287_v34  ;;  %1217 = vmatmul.mubr.f32.vlgmr.msra.gmra.mrb[0].mxu0 %v285_v2  ;;  %v1913_v2 = vsub.f32 %v924_v48, %v924_v48  ;;  %v361_v34 = vand.u32 4294901760, %v360_v8  ;;  %v1401_v48 = vpack.c.bf16 %v373_v61, %v366_v58 }
  0x3c   :  { %1315 = vmatpush3.bf16.msra.mxu1 %v1314_v37  ;;  %1387 = vmatpush3.bf16.msra.mxu0 %v1386_v38  ;;  %v401_v37 = vand.u32 4294901760, %v1935_v24  ;;  %v1398_v38 = vpack.c.bf16 %v359_v54, %v352_v44  ;;  %v395_v44 = vsub.f32 %v1933_v17, %v394_v36 }
  0x3d   :  { %1316 = vmatprep.subr.bf16.mxu1 %v1502_v1  ;;  %1388 = vmatprep.subr.bf16.mxu0 %v1502_v1  ;;  %v380_v12 = vand.u32 4294901760, %v1913_v2  ;;  %v1326_v28 = vpack.c.bf16 %v361_v34, %v354_v32  ;;  %v1356_v33 = vpack.c.bf16 %v1915_v3, %v1913_v2 }
  0x3e   :  { %1146 = vmatprep.mubr.msk.f32.mxu1 %vm2097_vm13, %v1504_v4  ;;  %1251 = vmatprep.mubr.msk.f32.mxu0 %vm2097_vm13, %v1504_v4  ;;  %v402_v54 = vsub.f32 %v1935_v24, %v401_v37  ;;  %v396_v0 = vand.u32 4294901760, %v395_v44  ;;  %v1407_v61 = vpack.c.bf16 %v401_v37, %v394_v36 }
  0x3f   :  { %v381_v26 = vsub.f32 %v1913_v2, %v380_v12  ;;  %v1404_v63 = vpack.c.bf16 %v387_v6, %v380_v12 }
  0x40   :  { %1318 = vmatpush3.bf16.msra.mxu1 %v1317_v55  ;;  %1390 = vmatpush3.bf16.msra.mxu0 %v1389_v47  ;;  %v388_v47 = vsub.f32 %v1915_v3, %v387_v6  ;;  %v403_v5 = vand.u32 4294901760, %v402_v54 }
  0x41   :  { %1319 = vmatprep.subr.bf16.mxu1 %v1502_v1  ;;  %1391 = vmatprep.subr.bf16.mxu0 %v1502_v1  ;;  %v382_v49 = vand.u32 4294901760, %v381_v26 }
  0x42   :  { %v389_v52 = vand.u32 4294901760, %v388_v47  ;;  %v1335_v58 = vpack.c.bf16 %v403_v5, %v396_v0 }
  0x44   :  { %1321 = vmatpush3.bf16.msra.mxu1 %v1320_v9  ;;  %1393 = vmatpush3.bf16.msra.mxu0 %v1392_v19  ;;  %v1332_v55 = vpack.c.bf16 %v389_v52, %v382_v49  ;;  %v1341_v9 = vpack.c.bf16 %v1764_v57, %v1762_v56 }
  0x45   :  { %1322 = vmatprep.subr.bf16.mxu1 %v1502_v1  ;;  %1394 = vmatprep.subr.bf16.mxu0 %v1502_v1 }
  0x48   :  { %1324 = vmatpush3.bf16.msra.mxu1 %v1323_v31  ;;  %1396 = vmatpush3.bf16.msra.mxu0 %v1395_v13 }
  0x49   :  { %1325 = vmatprep.subr.bf16.mxu1 %v1502_v1  ;;  %1397 = vmatprep.subr.bf16.mxu0 %v1502_v1 }
  0x4c   :  { %1327 = vmatpush3.bf16.msra.mxu1 %v1326_v28  ;;  %1399 = vmatpush3.bf16.msra.mxu0 %v1398_v38 }
  0x4d   :  { %1328 = vmatprep.subr.bf16.mxu1 %v1502_v1  ;;  %1400 = vmatprep.subr.bf16.mxu0 %v1502_v1 }
  0x50   :  { %1330 = vmatpush3.bf16.msra.mxu1 %v1329_v51  ;;  %1402 = vmatpush3.bf16.msra.mxu0 %v1401_v48 }
  0x51   :  { %1331 = vmatprep.subr.bf16.mxu1 %v1502_v1  ;;  %1403 = vmatprep.subr.bf16.mxu0 %v1502_v1 }
  0x54   :  { %1333 = vmatpush3.bf16.msra.mxu1 %v1332_v55  ;;  %1405 = vmatpush3.bf16.msra.mxu0 %v1404_v63 }
  0x55   :  { %1334 = vmatprep.subr.bf16.mxu1 %v1502_v1  ;;  %1406 = vmatprep.subr.bf16.mxu0 %v1502_v1 }
  0x58   :  { %1336 = vmatpush3.bf16.msra.mxu1 %v1335_v58  ;;  %1408 = vmatpush3.bf16.msra.mxu0 %v1407_v61 }
  0x59   :  { %1337 = vmatprep.subr.bf16.mxu1 %v1502_v1  ;;  %1409 = vmatprep.subr.bf16.mxu0 %v1502_v1 }
  0x5b   :  { %1147 = vmatmul.mubr.f32.vlgmr.msra.gmra.mrb[0].mxu1 %v1746_v50  ;;  %1252 = vmatmul.mubr.f32.vlgmr.msra.gmra.mrb[0].mxu0 %v1746_v50 }
  0x5c   :  { %1339 = vmatpush3.bf16.msra.mxu1 %v1338_v7  ;;  %1411 = vmatpush3.bf16.msk.msra.mxu0 %vm2098_vm11, %v1505_v16 }
  0x5d   :  { %1340 = vmatprep.subr.bf16.mxu1 %v1502_v1  ;;  %1412 = vmatprep.subr.bf16.mxu0 %v1502_v1 }
  0x5e   :  { %1181 = vmatprep.mubr.msk.f32.mxu1 %vm2097_vm13, %v1504_v4  ;;  %1286 = vmatprep.mubr.msk.f32.mxu0 %vm2097_vm13, %v1504_v4 }
  0x60   :  { %1342 = vmatpush3.bf16.msra.mxu1 %v1341_v9  ;;  %1414 = vmatpush3.bf16.msk.msra.mxu0 %vm2099_vm12, %v1505_v16 }
  0x61   :  { %1343 = vmatprep.subr.bf16.mxu1 %v1502_v1  ;;  %1415 = vmatprep.subr.bf16.mxu0 %v1502_v1 }
  0x64   :  { %1345 = vmatpush3.bf16.msra.mxu1 %v1344_v14  ;;  %1417 = vmatpush3.bf16.msk.msra.mxu0 %vm2100_vm10, %v1505_v16 }
  0x65   :  { %1346 = vmatprep.subr.bf16.mxu1 %v1502_v1  ;;  %1418 = vmatprep.subr.bf16.mxu0 %v1502_v1 }
  0x68   :  { %1348 = vmatpush3.bf16.msra.mxu1 %v1347_v40  ;;  %1420 = vmatpush3.bf16.msk.msra.mxu0 %vm1673_vm6, %v1505_v16  ;;  %vm94_vm6 = vcmask 31744  }
  0x69   :  { %1349 = vmatprep.subr.bf16.mxu1 %v1502_v1  ;;  %1421 = vmatprep.subr.bf16.mxu0 %v1502_v1  ;;  %95 = vst.msk [vmem:[#allocation2] sm:$0xff] %vm94_vm6, %v1504_v4 }
  0x6c   :  { %1351 = vmatpush3.bf16.msra.mxu1 %v1350_v20  ;;  %1423 = vmatpush3.bf16.msk.msra.mxu0 %vm1706_vm0, %v1505_v16 }
  0x6d   :  { %1352 = vmatprep.subr.bf16.mxu1 %v1502_v1  ;;  %1424 = vmatprep.subr.bf16.mxu0 %v1502_v1 }
  0x70   :  { %1354 = vmatpush3.bf16.msra.mxu1 %v1353_v25  ;;  %1426 = vmatpush3.bf16.msk.msra.mxu0 %vm1756_vm7, %v1505_v16  ;;  %v863_v2 = vld [vmem:[#allocation2] sm:$0xff] }
  0x71   :  { %1355 = vmatprep.subr.bf16.mxu1 %v1502_v1  ;;  %1427 = vmatprep.subr.bf16.mxu0 %v1502_v1 }
  0x74   :  { %1357 = vmatpush3.bf16.msra.mxu1 %v1356_v33  ;;  %1429 = vmatpush3.bf16.msk.msra.mxu0 %vm1820_vm3, %v1505_v16 }
  0x75   :  { %1358 = vmatprep.subr.bf16.mxu1 %v1502_v1  ;;  %1430 = vmatprep.subr.bf16.mxu0 %v1502_v1 }
  0x78   :  { %1360 = vmatpush3.bf16.msra.mxu1 %v1359_v41  ;;  %1432 = vmatpush3.bf16.msk.msra.mxu0 %vm1870_vm5, %v1505_v16  ;;  %v98_v16 = vld [vmem:[%s2040_s2] sm:$0xff]  ;;  %s1506_s2 = smov [#allocation6]  }
  0x79   :  { %v853_v27 = vsub.f32 1.0, %v98_v16  ;;  %s889_s26 = sshll.u32 %s1506_s2, 4  ;;  %s890_s26 = int_to_ptr.vmem [resolvable:$true] %s889_s26 }
  0x7a   :  { %s1475_s28 = scalar_lea.vmem %s890_s26, 128  ;;  %p1480_p9 = scmp.lt.s32.totalorder %s890_s26, %s890_s26 }
  0x7b   :  { %1182 = vmatmul.mubr.f32.vlgmr.msra.gmra.mrb[0].mxu1 %v1779_v59  ;;  %1287 = vmatmul.mubr.f32.vlgmr.msra.gmra.mrb[0].mxu0 %v1746_v50  ;;  %p1476_p8 = scmp.ne.s32.totalorder %s890_s26, %s1475_s28  ;;  %p1481_p10 = scmp.lt.s32.totalorder %s1475_s28, %s1475_s28 }
  0x7d   :  { %p1482_p11 = por %p1481_p10, %p1480_p9 }
  0x7f   :  { %p1483_p12 = pnand %p1482_p11, %p1476_p8 }
 0x14e   :  { %v544_v42 = vpop.f32.mrb[0].mxu1  ;;  %v839_v53 = vpop.f32.mrb[0].mxu0 }
 0x14f   :  { %v1433_v56 = vadd.f32 1e-12, %v544_v42  ;;  %v1183_v57 = vpop.f32.mrb[1].mxu1  ;;  %v1288_v60 = vpop.f32.mrb[1].mxu0 }
 0x151   :  { %v1434_v62 = vadd.f32 %v1433_v56, %v839_v53 }
 0x153   :  { %1451 = vrsqrt.f32 %v1434_v62  ;;  %vm845_vm0 = vcmp.eq.f32.partialorder %v1434_v62, inf  ;;  %v848_v11 = vand.u32 2147483648, %v1434_v62  ;;  %vm847_vm7 = vcmp.eq.f32.partialorder %v1434_v62, 0.0 }
 0x15d   :  { %v1452_v1 = vpop.eup %1451 }
 0x15e   :  { %v844_v10 = vmul.f32 %v1452_v1, %v1434_v62 }
 0x160   :  { %v846_v50 = vsel %vm845_vm0, %v1434_v62, %v844_v10 }
 0x161   :  { %v849_v59 = vsel %vm847_vm7, %v848_v11, %v846_v50 }
 0x162   :  { %v976_v15 = vadd.f32 -0.5, %v849_v59  ;;  %v854_v4 = vsub.f32 1.5, %v849_v59 }
 0x164   :  { %v851_v29 = vmax.f32 %v976_v15, 0.0  ;;  %v855_v30 = vmax.f32 %v854_v4, 0.0 }
 0x166   :  { %v852_v45 = vmul.f32 %v851_v29, %v98_v16  ;;  %v856_v46 = vmul.f32 %v855_v30, %v853_v27 }
 0x168   :  { %v857_v3 = vadd.f32 %v856_v46, %v852_v45 }
 0x16a   :  { %v864_v19 = vadd.f32 %v863_v2, %v857_v3 }
 0x16c   :  { %866 = vst.msk [vmem:[#allocation2] sm:$0xff] %vm94_vm6, %v864_v19 }
 0x173   :  { %v870_v21 = vld [vmem:[#allocation2] sm:$0xff] }
 0x174   :  { %v871_v22 = vsel %vm94_vm6, %v870_v21, 0.0 }
 0x175   :  { %872 = vadd.xlane.f32.xlu0 %v871_v22 }
 0x202   :  { %v873_v23 = vpop.xlane.xlu0 %872 }
 0x203   :  { %v874_v8 = vrot.slane %v873_v23, 4 }
 0x205   :  { %v875_v12 = vadd.f32 %v874_v8, %v873_v23 }
 0x207   :  { %v876_v6 = vrot.slane %v875_v12, 2 }
 0x209   :  { %v877_v17 = vadd.f32 %v876_v6, %v875_v12 }
 0x20b   :  { %v878_v24 = vrot.slane %v877_v17, 1 }
 0x20d   :  { %v879_v13 = vadd.f32 %v878_v24, %v877_v17 }
 0x20f   :  { %1443 = vpush %v879_v13 }
 0x240   :  { %s1444_s27 = spop %1443 }
 0x241   :  { %v881_v18 = vstv %s1444_s27 }
 0x242   :  { %882 = vst [vmem:[#allocation6] sm:$0xff] %v881_v18 }
 0x243   :  { %1486 = shalt.err (!%p1483_p12)
}
 0x244   :  { %s1487_s4 = scalar_lea.hbm %s2041_s3, 128 }
 0x245   :  { %p1488_p13 = scmp.ne.s32.totalorder %s2041_s3, %s1487_s4  ;;  %p1491_p0 = scmp.lt.u32.totalorder %s1487_s4, %s2041_s3 }
 0x247   :  { %p1493_p1 = pnand %p1491_p0, %p1488_p13 }
 0x249   :  { %1496 = shalt.err (!%p1493_p1)
}
 0x24a   :  { %892 = dma.vmem_to_hbm [thread:$0]  %s890_s26, 128, %s2041_s3, [#allocation5]  }
 0x24b   :  { %1499 = dma.done.wait [#allocation5], 128  }
 0x24c   :  { %1500 = vsyncadd [#allocation5], 4294967168 }
 0x24d   :  { %896 = vsyncpa [#allocation4], 1 }
 0x24e   :  { %897 = vsyncpa [#allocation5], 1 }

</bundles_post_ra>
